<compile_context>
chip_gen: v7x
topology: tpu7x:2x2x1
jax: 0.10.0
libtpu: 0.0.40
codegen_flags: <defaults>
</compile_context>

<pallas_src>
import functools

import jax
import jax.numpy as jnp
from jax.experimental import pallas as pl
from jax.experimental.pallas import tpu as pltpu


def _round_up(x, m):
    return ((x + m - 1) // m) * m


def _label_smoothing_kernel(pred_ref, tgt_ref, out_ref, *,
                            confidence, smooth_val, n_valid, tm):
    i = pl.program_id(0)

    x = pred_ref[...].astype(jnp.float32)          # (TM, C), cast in-kernel
    tgt = tgt_ref[...]                             # (TM, 1) int32
    c = x.shape[-1]

    # Numerically-stable log-softmax building blocks (row-wise over lanes).
    m = jnp.max(x, axis=-1, keepdims=True)                                 # (TM, 1)
    shifted = x - m                                                        # (TM, C)
    lse = jnp.log(jnp.sum(jnp.exp(shifted), axis=-1, keepdims=True))       # (TM, 1)

    # sum_c logp = sum_c shifted - C * lse
    sum_logp = jnp.sum(shifted, axis=-1, keepdims=True) - jnp.float32(c) * lse

    # logp[target] = shifted[target] - lse, extracted with a single masked sum.
    col = jax.lax.broadcasted_iota(jnp.int32, x.shape, 1)                  # (TM, C)
    shifted_tgt = jnp.sum(jnp.where(col == tgt, shifted, 0.0),
                          axis=-1, keepdims=True)                          # (TM, 1)
    logp_tgt = shifted_tgt - lse

    per_row = (-(confidence - smooth_val)) * logp_tgt - smooth_val * sum_logp

    # Zero padded rows so the wrapper can just sum everything and divide by N.
    row = jax.lax.broadcasted_iota(jnp.int32, (tm, 1), 0) + i * tm
    per_row = jnp.where(row < n_valid, per_row, 0.0)

    out_ref[...] = per_row


def label_smoothing_loss(pred, target, classes, smoothing=0.0):
    """Pallas-accelerated LabelSmoothingLoss forward. Returns a scalar f32."""
    n, c = pred.shape
    assert c == classes
    assert classes > 1, "smoothing / (classes - 1) requires classes > 1"
    confidence = float(1.0 - smoothing)
    smooth_val = float(smoothing / (classes - 1))

    # Row tile: large enough to amortize per-step overhead, multiple of 8 for
    # sublane tiling; pad N so every grid block is fully defined.
    tm = min(256, _round_up(n, 8))
    n_pad = _round_up(n, tm)
    num_tiles = n_pad // tm

    if n_pad != n:
        pred = jnp.pad(pred, ((0, n_pad - n), (0, 0)))
        target = jnp.pad(target, (0, n_pad - n))

    tgt2d = target.astype(jnp.int32).reshape(n_pad, 1)

    kernel = functools.partial(
        _label_smoothing_kernel,
        confidence=confidence, smooth_val=smooth_val, n_valid=n, tm=tm)

    # Double-buffered input tiles + output column + headroom; capped so a big
    # tile never exceeds what v7x (64 MiB physical VMEM) can grant.
    itemsize = jnp.dtype(pred.dtype).itemsize
    vmem_limit = int(min(max(4 * tm * c * itemsize + (8 << 20), 16 << 20), 48 << 20))

    per_row = pl.pallas_call(
        kernel,
        out_shape=jax.ShapeDtypeStruct((n_pad, 1), jnp.float32),
        grid=(num_tiles,),
        in_specs=[
            pl.BlockSpec((tm, c), lambda i: (i, 0)),   # logits row tile
            pl.BlockSpec((tm, 1), lambda i: (i, 0)),   # target column tile
        ],
        out_specs=pl.BlockSpec((tm, 1), lambda i: (i, 0)),
        compiler_params=pltpu.CompilerParams(
            dimension_semantics=("parallel",),
            vmem_limit_bytes=vmem_limit,
        ),
    )(pred, tgt2d)

    # Final mean as sum / N in f32 (padded rows contribute exact zeros).
    return jnp.sum(per_row) / jnp.float32(n)


def _reference_loss(pred, target, classes, smoothing):
    """Pure-JAX reference matching the PyTorch module."""
    logp = jax.nn.log_softmax(pred.astype(jnp.float32), axis=-1)
    confidence = 1.0 - smoothing
    smooth_val = smoothing / (classes - 1)
    true_dist = jnp.full_like(logp, smooth_val)
    true_dist = true_dist.at[jnp.arange(pred.shape[0]), target].set(confidence)
    return jnp.mean(jnp.sum(-true_dist * logp, axis=-1))


if __name__ == "__main__":
    # Small shapes consistent with the module: batch N=8, classes C=16.
    N, C = 8, 16
    smoothing = 0.1

    key = jax.random.PRNGKey(0)
    k_pred, k_tgt = jax.random.split(key)
    pred = jax.random.normal(k_pred, (N, C), dtype=jnp.float32)
    target = jax.random.randint(k_tgt, (N,), 0, C, dtype=jnp.int32)

    loss = label_smoothing_loss(pred, target, classes=C, smoothing=smoothing)
    loss = jax.block_until_ready(loss)

    ref = jax.block_until_ready(_reference_loss(pred, target, C, smoothing))
    assert jnp.allclose(loss, ref, rtol=1e-5, atol=1e-5), (loss, ref)

    print("KERNEL_OK")
</pallas_src>

<mosaic_0001>
module attributes {stable_mosaic.version = 11 : i64} {
  func.func @_label_smoothing_kernel(%arg0: i32, %arg1: memref<8x16xf32, #tpu.memory_space<vmem>>, %arg2: memref<8x1xi32, #tpu.memory_space<vmem>>, %arg3: memref<8x1xf32, #tpu.memory_space<vmem>>) attributes {dimension_semantics = [#tpu.dimension_semantics<parallel>], iteration_bounds = array<i64: 1>, scalar_prefetch = 0 : i64, scratch_operands = 0 : i64, tpu.core_type = #tpu.core_type<tc>, window_params = [{transform_indices = @transform_0, window_bounds = array<i64: 8, 16>}, {transform_indices = @transform_1, window_bounds = array<i64: 8, 1>}, {transform_indices = @transform_2, window_bounds = array<i64: 8, 1>}]} {
    %c0 = arith.constant 0 : index
    %c0_0 = arith.constant 0 : index
    %0 = vector.load %arg1[%c0, %c0_0] : memref<8x16xf32, #tpu.memory_space<vmem>>, vector<8x16xf32>
    %c0_1 = arith.constant 0 : index
    %c0_2 = arith.constant 0 : index
    %1 = vector.load %arg2[%c0_1, %c0_2] : memref<8x1xi32, #tpu.memory_space<vmem>>, vector<8x1xi32>
    %cst = arith.constant dense<0xFF800000> : vector<8xf32>
    %2 = vector.multi_reduction <maximumf>, %0, %cst [1] : vector<8x16xf32> to vector<8xf32>
    %3 = vector.shape_cast %2 : vector<8xf32> to vector<8x1xf32>
    %4 = vector.broadcast %3 : vector<8x1xf32> to vector<8x16xf32>
    %5 = arith.subf %0, %4 : vector<8x16xf32>
    %6 = math.exp %5 : vector<8x16xf32>
    %cst_3 = arith.constant dense<0.000000e+00> : vector<8xf32>
    %7 = vector.multi_reduction <add>, %6, %cst_3 [1] : vector<8x16xf32> to vector<8xf32>
    %8 = vector.shape_cast %7 : vector<8xf32> to vector<8x1xf32>
    %9 = math.log %8 : vector<8x1xf32>
    %cst_4 = arith.constant dense<0.000000e+00> : vector<8xf32>
    %10 = vector.multi_reduction <add>, %5, %cst_4 [1] : vector<8x16xf32> to vector<8xf32>
    %11 = vector.shape_cast %10 : vector<8xf32> to vector<8x1xf32>
    %cst_5 = arith.constant 1.600000e+01 : f32
    %12 = vector.broadcast %cst_5 : f32 to vector<8x1xf32>
    %13 = arith.mulf %12, %9 : vector<8x1xf32>
    %14 = arith.subf %11, %13 : vector<8x1xf32>
    %15 = tpu.iota {dimensions = array<i32: 1>} : vector<8x16xi32>
    %16 = vector.broadcast %1 : vector<8x1xi32> to vector<8x16xi32>
    %17 = arith.cmpi eq, %15, %16 : vector<8x16xi32>
    %cst_6 = arith.constant 0.000000e+00 : f32
    %18 = vector.broadcast %cst_6 : f32 to vector<8x16xf32>
    %19 = arith.select %17, %5, %18 : vector<8x16xi1>, vector<8x16xf32>
    %cst_7 = arith.constant dense<0.000000e+00> : vector<8xf32>
    %20 = vector.multi_reduction <add>, %19, %cst_7 [1] : vector<8x16xf32> to vector<8xf32>
    %21 = vector.shape_cast %20 : vector<8xf32> to vector<8x1xf32>
    %22 = arith.subf %21, %9 : vector<8x1xf32>
    %cst_8 = arith.constant -0.893333315 : f32
    %23 = vector.broadcast %cst_8 : f32 to vector<8x1xf32>
    %24 = arith.mulf %23, %22 : vector<8x1xf32>
    %cst_9 = arith.constant 0.00666666683 : f32
    %25 = vector.broadcast %cst_9 : f32 to vector<8x1xf32>
    %26 = arith.mulf %25, %14 : vector<8x1xf32>
    %27 = arith.subf %24, %26 : vector<8x1xf32>
    %28 = tpu.iota {dimensions = array<i32: 0>} : vector<8x1xi32>
    %c8_i32 = arith.constant 8 : i32
    %29 = arith.muli %arg0, %c8_i32 : i32
    %30 = vector.broadcast %29 : i32 to vector<8x1xi32>
    %31 = arith.addi %28, %30 : vector<8x1xi32>
    %c8_i32_10 = arith.constant 8 : i32
    %32 = vector.broadcast %c8_i32_10 : i32 to vector<8x1xi32>
    %33 = arith.cmpi slt, %31, %32 : vector<8x1xi32>
    %cst_11 = arith.constant 0.000000e+00 : f32
    %34 = vector.broadcast %cst_11 : f32 to vector<8x1xf32>
    %35 = arith.select %33, %27, %34 : vector<8x1xi1>, vector<8x1xf32>
    %c0_12 = arith.constant 0 : index
    %c0_13 = arith.constant 0 : index
    %36 = vector.load %arg3[%c0_12, %c0_13] : memref<8x1xf32, #tpu.memory_space<vmem>>, vector<8x1xf32>
    tpu.vector_store %arg3[%c0_12, %c0_13], %35 {strides = array<i32>} : memref<8x1xf32, #tpu.memory_space<vmem>>, vector<8x1xf32>,
    return
  }
  func.func @transform_0(%arg0: i32) -> (i32, i32) {
    %c0_i32 = arith.constant 0 : i32
    %c0_i32_0 = arith.constant 0 : i32
    return %arg0, %c0_i32 : i32, i32
  }
  func.func @transform_1(%arg0: i32) -> (i32, i32) {
    %c0_i32 = arith.constant 0 : i32
    %c0_i32_0 = arith.constant 0 : i32
    return %arg0, %c0_i32 : i32, i32
  }
  func.func @transform_2(%arg0: i32) -> (i32, i32) {
    %c0_i32 = arith.constant 0 : i32
    %c0_i32_0 = arith.constant 0 : i32
    return %arg0, %c0_i32 : i32, i32
  }
}

</mosaic_0001>

<bundles_post_ra>
// kernel: tpu_custom_call.1
= control target key start
LH: loop header
LB: loop body
LE: loop exit
PB: predicated region body
PF: predicated region fallthrough
CT: control target
= control target key end

     0   :  { %vm13_vm0 = vcmask 130048   ;;  %v63_v1 = vmov 0   ;;  %v30_v7 = vlaneseq  ;;  %vm51_vm2 = vcmask 7168   ;;  %s92_s0 = inlined_call_operand.vmem [shape: f32[8,16], index: 0, kind: input, shape index: {}]   ;;  %s93_s1 = inlined_call_operand.vmem [shape: s32[8,1], index: 1, kind: input, shape index: {}]   ;;  %s94_s2 = inlined_call_operand.vmem [shape: f32[8,1], index: 2, kind: output, shape index: {}]  }
   0x1   :  { %v11_v0 = vld [vmem:[%s92_s0] sm:$0xff]  ;;  %58 = vset.pattern.permute.xlu0 %v63_v1 }
   0x2   :  { %v14_v2 = vsel %vm13_vm0, %v11_v0, -inf  ;;  %v12_v3 = vld [vmem:[%s93_s1] sm:$0xff]  ;;  %v31_v8 = vand.u32 127, %v30_v7 }
   0x3   :  { %15 = vmax.xlane.f32.xlu0 %v14_v2 }
  0x19   :  { %33 = vperm.xlu0 %58, %v12_v3  }
  0x90   :  { %v16_v4 = vpop.xlane.xlu0 %15 }
  0x91   :  { %v17_v5 = vsub.f32 %v11_v0, %v16_v4 }
  0x93   :  { %v18_v6 = vmul.f32 1.442695, %v17_v5  ;;  %v25_v12 = vsel %vm13_vm0, %v17_v5, 0.0 }
  0x95   :  { %59 = vpow2.f32 %v18_v6 }
  0x98   :  { %v34_v10 = vpop.permute.xlu0 %33 }
  0x99   :  { %vm35_vm1 = vcmp.eq.s32.totalorder %v31_v8, %v34_v10 }
  0x9a   :  { %v36_v13 = vsel %vm35_vm1, %v17_v5, 0.0 }
  0x9b   :  { %v37_v14 = vsel %vm13_vm0, %v36_v13, 0.0 }
  0x9f   :  { %v60_v9 = vpop.eup %59 }
  0xa0   :  { %v20_v11 = vsel %vm13_vm0, %v60_v9, 0.0 }
  0xa1   :  { %21 = vadd.xlane.f32.xlu1 %v20_v11 }
  0xa5   :  { %26 = vadd.xlane.f32.xlu1 %v25_v12 }
  0xa9   :  { %38 = vadd.xlane.f32.xlu1 %v37_v14 }
 0x12e   :  { %v22_v15 = vpop.xlane.xlu1 %21 }
 0x12f   :  { %61 = vlog2.f32 %v22_v15 }
 0x132   :  { %v27_v16 = vpop.xlane.xlu1 %26 }
 0x136   :  { %v39_v19 = vpop.xlane.xlu1 %38 }
 0x139   :  { %v62_v17 = vpop.eup %61 }
 0x13a   :  { %v24_v18 = vmul.f32 0.6931472, %v62_v17 }
 0x13c   :  { %v28_v20 = vmul.f32 16.0, %v24_v18  ;;  %v40_v21 = vsub.f32 %v39_v19, %v24_v18 }
 0x13e   :  { %v29_v22 = vsub.f32 %v27_v16, %v28_v20  ;;  %v41_v24 = vmul.f32 -0.8933333, %v40_v21 }
 0x140   :  { %v42_v23 = vmul.f32 0.006666667, %v29_v22 }
 0x142   :  { %v43_v25 = vsub.f32 %v41_v24, %v42_v23 }
 0x144   :  { %52 = vst.msk [vmem:[%s94_s2] sm:$0xff] %vm51_vm2, %v43_v25 }

</bundles_post_ra>
